<compile_context>
chip_gen: v5e
topology: v5e:2x2
jax: 0.10.0
libtpu: 0.0.40
codegen_flags: <defaults>
</compile_context>

<pallas_src>
import jax
import jax.numpy as jnp
import numpy as np
from jax import lax
from jax.experimental import pallas as pl
from jax.experimental.pallas import tpu as pltpu


# ---------------- in-kernel helpers (traced) ----------------

def _conv_module(x, w1, s1, b1, w3, s2, b2, W, HW):
    """One 'conv_mod': relu(bn(conv3x3(relu(bn(conv1x1(x)))))) in (C, H*W) layout.

    x : (Cin, HW)      w1: (down, Cin)       w3: (up, 9*down)
    s1/b1: (down, 1)   s2/b2: (up, 1)
    """
    # conv1x1 + BN + ReLU  (single matmul, channels on sublanes, spatial on lanes)
    y = jnp.dot(w1, x, preferred_element_type=jnp.float32)          # (down, HW)
    y = jnp.maximum(y * s1 + b1, 0.0)
    down = y.shape[0]

    # Zero-pad along the flattened spatial (lane) axis: P = W+1 covers every
    # h-boundary read of the 3x3 stencil; w-boundary wraparounds are masked below.
    P = W + 1
    pad = jnp.zeros((down, P), jnp.float32)
    ypad = jnp.concatenate([pad, y, pad], axis=1)                    # (down, HW+2P)

    col = lax.broadcasted_iota(jnp.int32, (down, HW), 1) % W
    keep_l = col != 0            # tap dx=-1 invalid at w==0   (row wraparound)
    keep_r = col != (W - 1)      # tap dx=+1 invalid at w==W-1 (row wraparound)

    taps = []
    for ky in range(3):
        for kx in range(3):
            d = (ky - 1) * W + (kx - 1)
            t = lax.slice(ypad, (0, P + d), (down, P + d + HW))      # (down, HW)
            if kx == 0:
                t = jnp.where(keep_l, t, 0.0)
            elif kx == 2:
                t = jnp.where(keep_r, t, 0.0)
            taps.append(t)
    taps = jnp.concatenate(taps, axis=0)                             # (9*down, HW)

    # conv3x3 + BN + ReLU as ONE K = 9*down matmul
    z = jnp.dot(w3, taps, preferred_element_type=jnp.float32)        # (up, HW)
    return jnp.maximum(z * s2 + b2, 0.0)


def _make_convblock_kernel(W, HW, pooling):
    def kernel(x_ref,
               w1a_ref, s1a_ref, b1a_ref, w3a_ref, s2a_ref, b2a_ref,
               w1b_ref, s1b_ref, b1b_ref, w3b_ref, s2b_ref, b2b_ref,
               pool_ref, o_ref):
        x = x_ref[0]                                                  # (Cin, HW)
        h = _conv_module(x, w1a_ref[...], s1a_ref[...], b1a_ref[...],
                         w3a_ref[...], s2a_ref[...], b2a_ref[...], W, HW)
        s = h + _conv_module(h, w1b_ref[...], s1b_ref[...], b1b_ref[...],
                             w3b_ref[...], s2b_ref[...], b2b_ref[...], W, HW)
        if pooling == "maxpool":
            up = s.shape[0]
            L = HW - W - 1
            t00 = lax.slice(s, (0, 0), (up, L))
            t01 = lax.slice(s, (0, 1), (up, 1 + L))
            t10 = lax.slice(s, (0, W), (up, W + L))
            t11 = lax.slice(s, (0, W + 1), (up, W + 1 + L))
            m = jnp.maximum(jnp.maximum(t00, t01), jnp.maximum(t10, t11))
            pooled = jnp.dot(m, pool_ref[...],                        # strided select
                             preferred_element_type=jnp.float32)
        else:                                                         # avgpool: linear
            pooled = jnp.dot(s, pool_ref[...],
                             preferred_element_type=jnp.float32)
        o_ref[0] = pooled
    return kernel


# ---------------- wrapper ----------------

def conv_block_forward(x_nchw, params, pooling="maxpool"):
    N, Cin, H, W = x_nchw.shape
    HW = H * W
    up = params["conv_1"]["w3"].shape[0]
    x = x_nchw.reshape(N, Cin, HW)                     # free reshape, native NCHW order

    if pooling == "maxpool":
        Ho, Wo = H // 2, W // 2
        L = HW - W - 1
        sel = np.zeros((L, Ho * Wo), np.float32)
        for ho in range(Ho):
            for wo in range(Wo):
                sel[2 * ho * W + 2 * wo, ho * Wo + wo] = 1.0
        pool_mat = jnp.asarray(sel)
    else:
        Ho, Wo = H // 7, W // 7
        avg = np.zeros((HW, Ho * Wo), np.float32)
        for ho in range(Ho):
            for wo in range(Wo):
                for dy in range(7):
                    for dx in range(7):
                        avg[(7 * ho + dy) * W + (7 * wo + dx), ho * Wo + wo] = 1.0 / 49.0
        pool_mat = jnp.asarray(avg)

    p1, p2 = params["conv_1"], params["conv_2"]
    ins = [x,
           p1["w1"], p1["bn1_scale"], p1["bn1_shift"],
           p1["w3"], p1["bn2_scale"], p1["bn2_shift"],
           p2["w1"], p2["bn1_scale"], p2["bn1_shift"],
           p2["w3"], p2["bn2_scale"], p2["bn2_shift"],
           pool_mat]

    in_specs = [pl.BlockSpec((1, Cin, HW), lambda n: (n, 0, 0))] + [
        pl.BlockSpec(a.shape, lambda n: (0, 0)) for a in ins[1:]      # weights resident
    ]
    out_specs = pl.BlockSpec((1, up, Ho * Wo), lambda n: (n, 0, 0))

    out = pl.pallas_call(
        _make_convblock_kernel(W, HW, pooling),
        out_shape=jax.ShapeDtypeStruct((N, up, Ho * Wo), jnp.float32),
        grid_spec=pltpu.PrefetchScalarGridSpec(
            num_scalar_prefetch=0, grid=(N,),
            in_specs=in_specs, out_specs=out_specs),
        compiler_params=pltpu.CompilerParams(dimension_semantics=("parallel",)),
    )(*ins)
    return out.reshape(N, up, Ho, Wo)                  # NCHW output, like PyTorch


# ---------------- parameter init (deterministic, synthetic) ----------------

def _init_bn(key, c, eps=1e-5):
    k1, k2, k3, k4 = jax.random.split(key, 4)
    gamma = 1.0 + 0.2 * jax.random.normal(k1, (c,), jnp.float32)
    beta = 0.1 * jax.random.normal(k2, (c,), jnp.float32)
    running_mean = 0.1 * jax.random.normal(k3, (c,), jnp.float32)
    running_var = jnp.abs(jax.random.normal(k4, (c,), jnp.float32)) + 0.5
    scale = gamma / jnp.sqrt(running_var + eps)
    shift = beta - running_mean * scale
    return scale.reshape(c, 1), shift.reshape(c, 1)


def _init_conv_mod(key, inp_pre, down, up):
    k1, k2, k3, k4 = jax.random.split(key, 4)
    p = {}
    # torch Conv2d 1x1 weight (down, inp_pre, 1, 1) -> (down, inp_pre)
    p["w1"] = jax.random.normal(k1, (down, inp_pre), jnp.float32) / np.sqrt(inp_pre)
    p["bn1_scale"], p["bn1_shift"] = _init_bn(k2, down)
    # torch Conv2d 3x3 weight OIHW (up, down, 3, 3) -> (up, 9*down) with (ky,kx,c) order
    w3 = jax.random.normal(k3, (up, down, 3, 3), jnp.float32) / np.sqrt(9 * down)
    p["w3"] = jnp.transpose(w3, (0, 2, 3, 1)).reshape(up, 9 * down)
    p["bn2_scale"], p["bn2_shift"] = _init_bn(k4, up)
    return p


def init_conv_block_params(key, inp_pre, down, up):
    k1, k2 = jax.random.split(key, 2)
    return {"conv_1": _init_conv_mod(k1, inp_pre, down, up),
            "conv_2": _init_conv_mod(k2, up, down, up)}


# ---------------- pure-JAX reference ----------------

def _reference(x_nchw, params, pooling="maxpool"):
    def bn_relu(y, scale, shift):
        return jnp.maximum(y * scale.reshape(1, -1, 1, 1) + shift.reshape(1, -1, 1, 1), 0.0)

    def conv_mod(x, p):
        down, cin = p["w1"].shape
        up = p["w3"].shape[0]
        w1 = p["w1"].reshape(down, cin, 1, 1)                              # OIHW
        y = lax.conv_general_dilated(x, w1, (1, 1), "VALID",
                                     dimension_numbers=("NCHW", "OIHW", "NCHW"))
        y = bn_relu(y, p["bn1_scale"], p["bn1_shift"])
        w3 = p["w3"].reshape(up, 3, 3, down).transpose(0, 3, 1, 2)         # OIHW
        z = lax.conv_general_dilated(y, w3, (1, 1), ((1, 1), (1, 1)),
                                     dimension_numbers=("NCHW", "OIHW", "NCHW"))
        return bn_relu(z, p["bn2_scale"], p["bn2_shift"])

    h = conv_mod(x_nchw, params["conv_1"])
    s = h + conv_mod(h, params["conv_2"])
    if pooling == "maxpool":
        return lax.reduce_window(s, -jnp.inf, lax.max, (1, 1, 2, 2), (1, 1, 2, 2), "VALID")
    r = lax.reduce_window(s, 0.0, lax.add, (1, 1, 7, 7), (1, 1, 7, 7), "VALID")
    return r / 49.0


# ---------------- main ----------------

if __name__ == "__main__":
    # ConvBlock(inp_pre=4, down=8, up=16); x: NCHW (2, 4, 16, 16)
    key = jax.random.PRNGKey(0)
    kx, kp = jax.random.split(key)
    inp_pre, down, up = 4, 8, 16
    x_nchw = jax.random.normal(kx, (2, inp_pre, 16, 16), jnp.float32)
    params = init_conv_block_params(kp, inp_pre, down, up)

    # maxpool variant: output NCHW (2, 16, 8, 8)
    out_max = jax.block_until_ready(conv_block_forward(x_nchw, params, pooling="maxpool"))
    ref_max = jax.block_until_ready(_reference(x_nchw, params, pooling="maxpool"))
    np.testing.assert_allclose(np.asarray(out_max), np.asarray(ref_max), rtol=1e-4, atol=1e-4)

    # avgpool variant: output NCHW (2, 16, 2, 2)
    out_avg = jax.block_until_ready(conv_block_forward(x_nchw, params, pooling="avgpool"))
    ref_avg = jax.block_until_ready(_reference(x_nchw, params, pooling="avgpool"))
    np.testing.assert_allclose(np.asarray(out_avg), np.asarray(ref_avg), rtol=1e-4, atol=1e-4)

    print("KERNEL_OK")
</pallas_src>

<mosaic_0001>
module attributes {stable_mosaic.version = 11 : i64} {
  func.func @kernel(%arg0: i32, %arg1: memref<1x4x256xf32, #tpu.memory_space<vmem>>, %arg2: memref<8x4xf32, #tpu.memory_space<vmem>>, %arg3: memref<8x1xf32, #tpu.memory_space<vmem>>, %arg4: memref<8x1xf32, #tpu.memory_space<vmem>>, %arg5: memref<16x72xf32, #tpu.memory_space<vmem>>, %arg6: memref<16x1xf32, #tpu.memory_space<vmem>>, %arg7: memref<16x1xf32, #tpu.memory_space<vmem>>, %arg8: memref<8x16xf32, #tpu.memory_space<vmem>>, %arg9: memref<8x1xf32, #tpu.memory_space<vmem>>, %arg10: memref<8x1xf32, #tpu.memory_space<vmem>>, %arg11: memref<16x72xf32, #tpu.memory_space<vmem>>, %arg12: memref<16x1xf32, #tpu.memory_space<vmem>>, %arg13: memref<16x1xf32, #tpu.memory_space<vmem>>, %arg14: memref<239x64xf32, #tpu.memory_space<vmem>>, %arg15: memref<1x16x64xf32, #tpu.memory_space<vmem>>) attributes {dimension_semantics = [#tpu.dimension_semantics<parallel>], iteration_bounds = array<i64: 2>, scalar_prefetch = 0 : i64, scratch_operands = 0 : i64, tpu.core_type = #tpu.core_type<tc>, window_params = [{transform_indices = @transform_0, window_bounds = array<i64: 1, 4, 256>}, {pipeline_mode = #tpu.pipeline_mode<synchronous>, transform_indices = @transform_1, window_bounds = array<i64: 8, 4>}, {pipeline_mode = #tpu.pipeline_mode<synchronous>, transform_indices = @transform_2, window_bounds = array<i64: 8, 1>}, {pipeline_mode = #tpu.pipeline_mode<synchronous>, transform_indices = @transform_3, window_bounds = array<i64: 8, 1>}, {pipeline_mode = #tpu.pipeline_mode<synchronous>, transform_indices = @transform_4, window_bounds = array<i64: 16, 72>}, {pipeline_mode = #tpu.pipeline_mode<synchronous>, transform_indices = @transform_5, window_bounds = array<i64: 16, 1>}, {pipeline_mode = #tpu.pipeline_mode<synchronous>, transform_indices = @transform_6, window_bounds = array<i64: 16, 1>}, {pipeline_mode = #tpu.pipeline_mode<synchronous>, transform_indices = @transform_7, window_bounds = array<i64: 8, 16>}, {pipeline_mode = #tpu.pipeline_mode<synchronous>, transform_indices = @transform_8, window_bounds = array<i64: 8, 1>}, {pipeline_mode = #tpu.pipeline_mode<synchronous>, transform_indices = @transform_9, window_bounds = array<i64: 8, 1>}, {pipeline_mode = #tpu.pipeline_mode<synchronous>, transform_indices = @transform_10, window_bounds = array<i64: 16, 72>}, {pipeline_mode = #tpu.pipeline_mode<synchronous>, transform_indices = @transform_11, window_bounds = array<i64: 16, 1>}, {pipeline_mode = #tpu.pipeline_mode<synchronous>, transform_indices = @transform_12, window_bounds = array<i64: 16, 1>}, {pipeline_mode = #tpu.pipeline_mode<synchronous>, transform_indices = @transform_13, window_bounds = array<i64: 239, 64>}, {transform_indices = @transform_14, window_bounds = array<i64: 1, 16, 64>}]} {
    %c0 = arith.constant 0 : index
    %c0_0 = arith.constant 0 : index
    %c0_1 = arith.constant 0 : index
    %0 = vector.load %arg1[%c0, %c0_0, %c0_1] : memref<1x4x256xf32, #tpu.memory_space<vmem>>, vector<1x4x256xf32>
    %1 = vector.shape_cast %0 : vector<1x4x256xf32> to vector<4x256xf32>
    %c0_2 = arith.constant 0 : index
    %c0_3 = arith.constant 0 : index
    %2 = vector.load %arg2[%c0_2, %c0_3] : memref<8x4xf32, #tpu.memory_space<vmem>>, vector<8x4xf32>
    %c0_4 = arith.constant 0 : index
    %c0_5 = arith.constant 0 : index
    %3 = vector.load %arg3[%c0_4, %c0_5] : memref<8x1xf32, #tpu.memory_space<vmem>>, vector<8x1xf32>
    %c0_6 = arith.constant 0 : index
    %c0_7 = arith.constant 0 : index
    %4 = vector.load %arg4[%c0_6, %c0_7] : memref<8x1xf32, #tpu.memory_space<vmem>>, vector<8x1xf32>
    %c0_8 = arith.constant 0 : index
    %c0_9 = arith.constant 0 : index
    %5 = vector.load %arg5[%c0_8, %c0_9] : memref<16x72xf32, #tpu.memory_space<vmem>>, vector<16x72xf32>
    %c0_10 = arith.constant 0 : index
    %c0_11 = arith.constant 0 : index
    %6 = vector.load %arg6[%c0_10, %c0_11] : memref<16x1xf32, #tpu.memory_space<vmem>>, vector<16x1xf32>
    %c0_12 = arith.constant 0 : index
    %c0_13 = arith.constant 0 : index
    %7 = vector.load %arg7[%c0_12, %c0_13] : memref<16x1xf32, #tpu.memory_space<vmem>>, vector<16x1xf32>
    %cst = arith.constant dense<0.000000e+00> : vector<8x256xf32>
    %8 = tpu.matmul %2, %1, %cst {dimension_numbers = #tpu.dot_dimension_numbers<[1], [0], [0], [1], [0, 0, 1, 1], [], []>} : vector<8x4xf32>, vector<4x256xf32>, vector<8x256xf32> -> vector<8x256xf32>
    %9 = vector.broadcast %3 : vector<8x1xf32> to vector<8x256xf32>
    %10 = arith.mulf %8, %9 : vector<8x256xf32>
    %11 = vector.broadcast %4 : vector<8x1xf32> to vector<8x256xf32>
    %12 = arith.addf %10, %11 : vector<8x256xf32>
    %cst_14 = arith.constant 0.000000e+00 : f32
    %13 = vector.broadcast %cst_14 : f32 to vector<8x256xf32>
    %14 = arith.maximumf %12, %13 : vector<8x256xf32>
    %cst_15 = arith.constant 0.000000e+00 : f32
    %15 = vector.broadcast %cst_15 : f32 to vector<8x17xf32>
    %16 = tpu.concatenate %15, %14, %15 in 1 : vector<8x17xf32>, vector<8x256xf32>, vector<8x17xf32> -> vector<8x290xf32>
    %17 = tpu.iota {dimensions = array<i32: 1>} : vector<8x256xi32>
    %c16_i32 = arith.constant 16 : i32
    %c0_i32 = arith.constant 0 : i32
    %18 = arith.cmpi eq, %c16_i32, %c0_i32 : i32
    %c1_i32 = arith.constant 1 : i32
    %19 = arith.select %18, %c1_i32, %c16_i32 : i32
    %20 = vector.broadcast %19 : i32 to vector<8x256xi32>
    %21 = arith.remsi %17, %20 : vector<8x256xi32>
    %c0_i32_16 = arith.constant 0 : i32
    %22 = vector.broadcast %c0_i32_16 : i32 to vector<8x256xi32>
    %23 = arith.cmpi ne, %21, %22 : vector<8x256xi32>
    %c0_i32_17 = arith.constant 0 : i32
    %24 = vector.broadcast %c0_i32_17 : i32 to vector<8x256xi32>
    %25 = arith.cmpi slt, %21, %24 : vector<8x256xi32>
    %c0_i32_18 = arith.constant 0 : i32
    %26 = arith.cmpi slt, %19, %c0_i32_18 : i32
    %27 = vector.broadcast %26 : i1 to vector<8x256xi1>
    %28 = vector.broadcast %27 : vector<8x256xi1> to vector<8x256xi1>
    %29 = arith.xori %25, %28 : vector<8x256xi1>
    %30 = arith.andi %29, %23 : vector<8x256xi1>
    %31 = vector.broadcast %19 : i32 to vector<8x256xi32>
    %32 = arith.addi %21, %31 : vector<8x256xi32>
    %33 = arith.select %30, %32, %21 : vector<8x256xi1>, vector<8x256xi32>
    %c0_i32_19 = arith.constant 0 : i32
    %34 = vector.broadcast %c0_i32_19 : i32 to vector<8x256xi32>
    %35 = arith.cmpi ne, %33, %34 : vector<8x256xi32>
    %c15_i32 = arith.constant 15 : i32
    %36 = vector.broadcast %c15_i32 : i32 to vector<8x256xi32>
    %37 = arith.cmpi ne, %33, %36 : vector<8x256xi32>
    %38 = vector.extract_strided_slice %16 {offsets = [0, 0], sizes = [8, 256], strides = [1, 1]} : vector<8x290xf32> to vector<8x256xf32>
    %cst_20 = arith.constant 0.000000e+00 : f32
    %39 = vector.broadcast %cst_20 : f32 to vector<8x256xf32>
    %40 = arith.select %35, %38, %39 : vector<8x256xi1>, vector<8x256xf32>
    %41 = vector.extract_strided_slice %16 {offsets = [0, 1], sizes = [8, 256], strides = [1, 1]} : vector<8x290xf32> to vector<8x256xf32>
    %42 = vector.extract_strided_slice %16 {offsets = [0, 2], sizes = [8, 256], strides = [1, 1]} : vector<8x290xf32> to vector<8x256xf32>
    %cst_21 = arith.constant 0.000000e+00 : f32
    %43 = vector.broadcast %cst_21 : f32 to vector<8x256xf32>
    %44 = arith.select %37, %42, %43 : vector<8x256xi1>, vector<8x256xf32>
    %45 = vector.extract_strided_slice %16 {offsets = [0, 16], sizes = [8, 256], strides = [1, 1]} : vector<8x290xf32> to vector<8x256xf32>
    %cst_22 = arith.constant 0.000000e+00 : f32
    %46 = vector.broadcast %cst_22 : f32 to vector<8x256xf32>
    %47 = arith.select %35, %45, %46 : vector<8x256xi1>, vector<8x256xf32>
    %48 = vector.extract_strided_slice %16 {offsets = [0, 17], sizes = [8, 256], strides = [1, 1]} : vector<8x290xf32> to vector<8x256xf32>
    %49 = vector.extract_strided_slice %16 {offsets = [0, 18], sizes = [8, 256], strides = [1, 1]} : vector<8x290xf32> to vector<8x256xf32>
    %cst_23 = arith.constant 0.000000e+00 : f32
    %50 = vector.broadcast %cst_23 : f32 to vector<8x256xf32>
    %51 = arith.select %37, %49, %50 : vector<8x256xi1>, vector<8x256xf32>
    %52 = vector.extract_strided_slice %16 {offsets = [0, 32], sizes = [8, 256], strides = [1, 1]} : vector<8x290xf32> to vector<8x256xf32>
    %cst_24 = arith.constant 0.000000e+00 : f32
    %53 = vector.broadcast %cst_24 : f32 to vector<8x256xf32>
    %54 = arith.select %35, %52, %53 : vector<8x256xi1>, vector<8x256xf32>
    %55 = vector.extract_strided_slice %16 {offsets = [0, 33], sizes = [8, 256], strides = [1, 1]} : vector<8x290xf32> to vector<8x256xf32>
    %56 = vector.extract_strided_slice %16 {offsets = [0, 34], sizes = [8, 256], strides = [1, 1]} : vector<8x290xf32> to vector<8x256xf32>
    %cst_25 = arith.constant 0.000000e+00 : f32
    %57 = vector.broadcast %cst_25 : f32 to vector<8x256xf32>
    %58 = arith.select %37, %56, %57 : vector<8x256xi1>, vector<8x256xf32>
    %59 = tpu.concatenate %40, %41, %44, %47, %48, %51, %54, %55, %58 in 0 : vector<8x256xf32>, vector<8x256xf32>, vector<8x256xf32>, vector<8x256xf32>, vector<8x256xf32>, vector<8x256xf32>, vector<8x256xf32>, vector<8x256xf32>, vector<8x256xf32> -> vector<72x256xf32>
    %cst_26 = arith.constant dense<0.000000e+00> : vector<16x256xf32>
    %60 = tpu.matmul %5, %59, %cst_26 {dimension_numbers = #tpu.dot_dimension_numbers<[1], [0], [0], [1], [0, 0, 1, 1], [], []>} : vector<16x72xf32>, vector<72x256xf32>, vector<16x256xf32> -> vector<16x256xf32>
    %61 = vector.broadcast %6 : vector<16x1xf32> to vector<16x256xf32>
    %62 = arith.mulf %60, %61 : vector<16x256xf32>
    %63 = vector.broadcast %7 : vector<16x1xf32> to vector<16x256xf32>
    %64 = arith.addf %62, %63 : vector<16x256xf32>
    %cst_27 = arith.constant 0.000000e+00 : f32
    %65 = vector.broadcast %cst_27 : f32 to vector<16x256xf32>
    %66 = arith.maximumf %64, %65 : vector<16x256xf32>
    %c0_28 = arith.constant 0 : index
    %c0_29 = arith.constant 0 : index
    %67 = vector.load %arg8[%c0_28, %c0_29] : memref<8x16xf32, #tpu.memory_space<vmem>>, vector<8x16xf32>
    %c0_30 = arith.constant 0 : index
    %c0_31 = arith.constant 0 : index
    %68 = vector.load %arg9[%c0_30, %c0_31] : memref<8x1xf32, #tpu.memory_space<vmem>>, vector<8x1xf32>
    %c0_32 = arith.constant 0 : index
    %c0_33 = arith.constant 0 : index
    %69 = vector.load %arg10[%c0_32, %c0_33] : memref<8x1xf32, #tpu.memory_space<vmem>>, vector<8x1xf32>
    %c0_34 = arith.constant 0 : index
    %c0_35 = arith.constant 0 : index
    %70 = vector.load %arg11[%c0_34, %c0_35] : memref<16x72xf32, #tpu.memory_space<vmem>>, vector<16x72xf32>
    %c0_36 = arith.constant 0 : index
    %c0_37 = arith.constant 0 : index
    %71 = vector.load %arg12[%c0_36, %c0_37] : memref<16x1xf32, #tpu.memory_space<vmem>>, vector<16x1xf32>
    %c0_38 = arith.constant 0 : index
    %c0_39 = arith.constant 0 : index
    %72 = vector.load %arg13[%c0_38, %c0_39] : memref<16x1xf32, #tpu.memory_space<vmem>>, vector<16x1xf32>
    %cst_40 = arith.constant dense<0.000000e+00> : vector<8x256xf32>
    %73 = tpu.matmul %67, %66, %cst_40 {dimension_numbers = #tpu.dot_dimension_numbers<[1], [0], [0], [1], [0, 0, 1, 1], [], []>} : vector<8x16xf32>, vector<16x256xf32>, vector<8x256xf32> -> vector<8x256xf32>
    %74 = vector.broadcast %68 : vector<8x1xf32> to vector<8x256xf32>
    %75 = arith.mulf %73, %74 : vector<8x256xf32>
    %76 = vector.broadcast %69 : vector<8x1xf32> to vector<8x256xf32>
    %77 = arith.addf %75, %76 : vector<8x256xf32>
    %cst_41 = arith.constant 0.000000e+00 : f32
    %78 = vector.broadcast %cst_41 : f32 to vector<8x256xf32>
    %79 = arith.maximumf %77, %78 : vector<8x256xf32>
    %cst_42 = arith.constant 0.000000e+00 : f32
    %80 = vector.broadcast %cst_42 : f32 to vector<8x17xf32>
    %81 = tpu.concatenate %80, %79, %80 in 1 : vector<8x17xf32>, vector<8x256xf32>, vector<8x17xf32> -> vector<8x290xf32>
    %82 = tpu.iota {dimensions = array<i32: 1>} : vector<8x256xi32>
    %c16_i32_43 = arith.constant 16 : i32
    %c0_i32_44 = arith.constant 0 : i32
    %83 = arith.cmpi eq, %c16_i32_43, %c0_i32_44 : i32
    %c1_i32_45 = arith.constant 1 : i32
    %84 = arith.select %83, %c1_i32_45, %c16_i32_43 : i32
    %85 = vector.broadcast %84 : i32 to vector<8x256xi32>
    %86 = arith.remsi %82, %85 : vector<8x256xi32>
    %c0_i32_46 = arith.constant 0 : i32
    %87 = vector.broadcast %c0_i32_46 : i32 to vector<8x256xi32>
    %88 = arith.cmpi ne, %86, %87 : vector<8x256xi32>
    %c0_i32_47 = arith.constant 0 : i32
    %89 = vector.broadcast %c0_i32_47 : i32 to vector<8x256xi32>
    %90 = arith.cmpi slt, %86, %89 : vector<8x256xi32>
    %c0_i32_48 = arith.constant 0 : i32
    %91 = arith.cmpi slt, %84, %c0_i32_48 : i32
    %92 = vector.broadcast %91 : i1 to vector<8x256xi1>
    %93 = vector.broadcast %92 : vector<8x256xi1> to vector<8x256xi1>
    %94 = arith.xori %90, %93 : vector<8x256xi1>
    %95 = arith.andi %94, %88 : vector<8x256xi1>
    %96 = vector.broadcast %84 : i32 to vector<8x256xi32>
    %97 = arith.addi %86, %96 : vector<8x256xi32>
    %98 = arith.select %95, %97, %86 : vector<8x256xi1>, vector<8x256xi32>
    %c0_i32_49 = arith.constant 0 : i32
    %99 = vector.broadcast %c0_i32_49 : i32 to vector<8x256xi32>
    %100 = arith.cmpi ne, %98, %99 : vector<8x256xi32>
    %c15_i32_50 = arith.constant 15 : i32
    %101 = vector.broadcast %c15_i32_50 : i32 to vector<8x256xi32>
    %102 = arith.cmpi ne, %98, %101 : vector<8x256xi32>
    %103 = vector.extract_strided_slice %81 {offsets = [0, 0], sizes = [8, 256], strides = [1, 1]} : vector<8x290xf32> to vector<8x256xf32>
    %cst_51 = arith.constant 0.000000e+00 : f32
    %104 = vector.broadcast %cst_51 : f32 to vector<8x256xf32>
    %105 = arith.select %100, %103, %104 : vector<8x256xi1>, vector<8x256xf32>
    %106 = vector.extract_strided_slice %81 {offsets = [0, 1], sizes = [8, 256], strides = [1, 1]} : vector<8x290xf32> to vector<8x256xf32>
    %107 = vector.extract_strided_slice %81 {offsets = [0, 2], sizes = [8, 256], strides = [1, 1]} : vector<8x290xf32> to vector<8x256xf32>
    %cst_52 = arith.constant 0.000000e+00 : f32
    %108 = vector.broadcast %cst_52 : f32 to vector<8x256xf32>
    %109 = arith.select %102, %107, %108 : vector<8x256xi1>, vector<8x256xf32>
    %110 = vector.extract_strided_slice %81 {offsets = [0, 16], sizes = [8, 256], strides = [1, 1]} : vector<8x290xf32> to vector<8x256xf32>
    %cst_53 = arith.constant 0.000000e+00 : f32
    %111 = vector.broadcast %cst_53 : f32 to vector<8x256xf32>
    %112 = arith.select %100, %110, %111 : vector<8x256xi1>, vector<8x256xf32>
    %113 = vector.extract_strided_slice %81 {offsets = [0, 17], sizes = [8, 256], strides = [1, 1]} : vector<8x290xf32> to vector<8x256xf32>
    %114 = vector.extract_strided_slice %81 {offsets = [0, 18], sizes = [8, 256], strides = [1, 1]} : vector<8x290xf32> to vector<8x256xf32>
    %cst_54 = arith.constant 0.000000e+00 : f32
    %115 = vector.broadcast %cst_54 : f32 to vector<8x256xf32>
    %116 = arith.select %102, %114, %115 : vector<8x256xi1>, vector<8x256xf32>
    %117 = vector.extract_strided_slice %81 {offsets = [0, 32], sizes = [8, 256], strides = [1, 1]} : vector<8x290xf32> to vector<8x256xf32>
    %cst_55 = arith.constant 0.000000e+00 : f32
    %118 = vector.broadcast %cst_55 : f32 to vector<8x256xf32>
    %119 = arith.select %100, %117, %118 : vector<8x256xi1>, vector<8x256xf32>
    %120 = vector.extract_strided_slice %81 {offsets = [0, 33], sizes = [8, 256], strides = [1, 1]} : vector<8x290xf32> to vector<8x256xf32>
    %121 = vector.extract_strided_slice %81 {offsets = [0, 34], sizes = [8, 256], strides = [1, 1]} : vector<8x290xf32> to vector<8x256xf32>
    %cst_56 = arith.constant 0.000000e+00 : f32
    %122 = vector.broadcast %cst_56 : f32 to vector<8x256xf32>
    %123 = arith.select %102, %121, %122 : vector<8x256xi1>, vector<8x256xf32>
    %124 = tpu.concatenate %105, %106, %109, %112, %113, %116, %119, %120, %123 in 0 : vector<8x256xf32>, vector<8x256xf32>, vector<8x256xf32>, vector<8x256xf32>, vector<8x256xf32>, vector<8x256xf32>, vector<8x256xf32>, vector<8x256xf32>, vector<8x256xf32> -> vector<72x256xf32>
    %cst_57 = arith.constant dense<0.000000e+00> : vector<16x256xf32>
    %125 = tpu.matmul %70, %124, %cst_57 {dimension_numbers = #tpu.dot_dimension_numbers<[1], [0], [0], [1], [0, 0, 1, 1], [], []>} : vector<16x72xf32>, vector<72x256xf32>, vector<16x256xf32> -> vector<16x256xf32>
    %126 = vector.broadcast %71 : vector<16x1xf32> to vector<16x256xf32>
    %127 = arith.mulf %125, %126 : vector<16x256xf32>
    %128 = vector.broadcast %72 : vector<16x1xf32> to vector<16x256xf32>
    %129 = arith.addf %127, %128 : vector<16x256xf32>
    %cst_58 = arith.constant 0.000000e+00 : f32
    %130 = vector.broadcast %cst_58 : f32 to vector<16x256xf32>
    %131 = arith.maximumf %129, %130 : vector<16x256xf32>
    %132 = arith.addf %66, %131 : vector<16x256xf32>
    %133 = vector.extract_strided_slice %132 {offsets = [0, 0], sizes = [16, 239], strides = [1, 1]} : vector<16x256xf32> to vector<16x239xf32>
    %134 = vector.extract_strided_slice %132 {offsets = [0, 1], sizes = [16, 239], strides = [1, 1]} : vector<16x256xf32> to vector<16x239xf32>
    %135 = vector.extract_strided_slice %132 {offsets = [0, 16], sizes = [16, 239], strides = [1, 1]} : vector<16x256xf32> to vector<16x239xf32>
    %136 = vector.extract_strided_slice %132 {offsets = [0, 17], sizes = [16, 239], strides = [1, 1]} : vector<16x256xf32> to vector<16x239xf32>
    %137 = arith.maximumf %133, %134 : vector<16x239xf32>
    %138 = arith.maximumf %135, %136 : vector<16x239xf32>
    %139 = arith.maximumf %137, %138 : vector<16x239xf32>
    %c0_59 = arith.constant 0 : index
    %c0_60 = arith.constant 0 : index
    %140 = vector.load %arg14[%c0_59, %c0_60] : memref<239x64xf32, #tpu.memory_space<vmem>>, vector<239x64xf32>
    %cst_61 = arith.constant dense<0.000000e+00> : vector<16x64xf32>
    %141 = tpu.matmul %139, %140, %cst_61 {dimension_numbers = #tpu.dot_dimension_numbers<[1], [0], [0], [1], [0, 0, 1, 1], [], []>} : vector<16x239xf32>, vector<239x64xf32>, vector<16x64xf32> -> vector<16x64xf32>
    %c0_62 = arith.constant 0 : index
    %c0_63 = arith.constant 0 : index
    %c0_64 = arith.constant 0 : index
    %142 = vector.load %arg15[%c0_62, %c0_63, %c0_64] : memref<1x16x64xf32, #tpu.memory_space<vmem>>, vector<1x16x64xf32>
    %143 = vector.shape_cast %142 : vector<1x16x64xf32> to vector<16x64xf32>
    %144 = vector.shape_cast %141 : vector<16x64xf32> to vector<1x16x64xf32>
    tpu.vector_store %arg15[%c0_62, %c0_63, %c0_64], %144 {strides = array<i32>} : memref<1x16x64xf32, #tpu.memory_space<vmem>>, vector<1x16x64xf32>,
    return
  }
  func.func @transform_0(%arg0: i32) -> (i32, i32, i32) {
    %c0_i32 = arith.constant 0 : i32
    %c0_i32_0 = arith.constant 0 : i32
    %c0_i32_1 = arith.constant 0 : i32
    return %arg0, %c0_i32, %c0_i32_0 : i32, i32, i32
  }
  func.func @transform_1(%arg0: i32) -> (i32, i32) {
    %c0_i32 = arith.constant 0 : i32
    %c0_i32_0 = arith.constant 0 : i32
    %c0_i32_1 = arith.constant 0 : i32
    return %c0_i32, %c0_i32_0 : i32, i32
  }
  func.func @transform_2(%arg0: i32) -> (i32, i32) {
    %c0_i32 = arith.constant 0 : i32
    %c0_i32_0 = arith.constant 0 : i32
    %c0_i32_1 = arith.constant 0 : i32
    return %c0_i32, %c0_i32_0 : i32, i32
  }
  func.func @transform_3(%arg0: i32) -> (i32, i32) {
    %c0_i32 = arith.constant 0 : i32
    %c0_i32_0 = arith.constant 0 : i32
    %c0_i32_1 = arith.constant 0 : i32
    return %c0_i32, %c0_i32_0 : i32, i32
  }
  func.func @transform_4(%arg0: i32) -> (i32, i32) {
    %c0_i32 = arith.constant 0 : i32
    %c0_i32_0 = arith.constant 0 : i32
    %c0_i32_1 = arith.constant 0 : i32
    return %c0_i32, %c0_i32_0 : i32, i32
  }
  func.func @transform_5(%arg0: i32) -> (i32, i32) {
    %c0_i32 = arith.constant 0 : i32
    %c0_i32_0 = arith.constant 0 : i32
    %c0_i32_1 = arith.constant 0 : i32
    return %c0_i32, %c0_i32_0 : i32, i32
  }
  func.func @transform_6(%arg0: i32) -> (i32, i32) {
    %c0_i32 = arith.constant 0 : i32
    %c0_i32_0 = arith.constant 0 : i32
    %c0_i32_1 = arith.constant 0 : i32
    return %c0_i32, %c0_i32_0 : i32, i32
  }
  func.func @transform_7(%arg0: i32) -> (i32, i32) {
    %c0_i32 = arith.constant 0 : i32
    %c0_i32_0 = arith.constant 0 : i32
    %c0_i32_1 = arith.constant 0 : i32
    return %c0_i32, %c0_i32_0 : i32, i32
  }
  func.func @transform_8(%arg0: i32) -> (i32, i32) {
    %c0_i32 = arith.constant 0 : i32
    %c0_i32_0 = arith.constant 0 : i32
    %c0_i32_1 = arith.constant 0 : i32
    return %c0_i32, %c0_i32_0 : i32, i32
  }
  func.func @transform_9(%arg0: i32) -> (i32, i32) {
    %c0_i32 = arith.constant 0 : i32
    %c0_i32_0 = arith.constant 0 : i32
    %c0_i32_1 = arith.constant 0 : i32
    return %c0_i32, %c0_i32_0 : i32, i32
  }
  func.func @transform_10(%arg0: i32) -> (i32, i32) {
    %c0_i32 = arith.constant 0 : i32
    %c0_i32_0 = arith.constant 0 : i32
    %c0_i32_1 = arith.constant 0 : i32
    return %c0_i32, %c0_i32_0 : i32, i32
  }
  func.func @transform_11(%arg0: i32) -> (i32, i32) {
    %c0_i32 = arith.constant 0 : i32
    %c0_i32_0 = arith.constant 0 : i32
    %c0_i32_1 = arith.constant 0 : i32
    return %c0_i32, %c0_i32_0 : i32, i32
  }
  func.func @transform_12(%arg0: i32) -> (i32, i32) {
    %c0_i32 = arith.constant 0 : i32
    %c0_i32_0 = arith.constant 0 : i32
    %c0_i32_1 = arith.constant 0 : i32
    return %c0_i32, %c0_i32_0 : i32, i32
  }
  func.func @transform_13(%arg0: i32) -> (i32, i32) {
    %c0_i32 = arith.constant 0 : i32
    %c0_i32_0 = arith.constant 0 : i32
    %c0_i32_1 = arith.constant 0 : i32
    return %c0_i32, %c0_i32_0 : i32, i32
  }
  func.func @transform_14(%arg0: i32) -> (i32, i32, i32) {
    %c0_i32 = arith.constant 0 : i32
    %c0_i32_0 = arith.constant 0 : i32
    %c0_i32_1 = arith.constant 0 : i32
    return %arg0, %c0_i32, %c0_i32_0 : i32, i32, i32
  }
}

</mosaic_0001>

<bundles_post_ra>
// kernel: tpu_custom_call.1
= control target key start
LH: loop header
LB: loop body
LE: loop exit
PB: predicated region body
PF: predicated region fallthrough
CT: control target
= control target key end

     0   :  { %s2019_s0 = inlined_call_operand.vmem [shape: f32[2,4,256], index: 0, kind: input, shape index: {}]   ;;  %s2020_s1 = inlined_call_operand.vmem [shape: f32[8,4], index: 1, kind: input, shape index: {}]   ;;  %s2021_s2 = inlined_call_operand.vmem [shape: f32[8,1], index: 2, kind: input, shape index: {}]   ;;  %s2022_s3 = inlined_call_operand.vmem [shape: f32[8,1], index: 3, kind: input, shape index: {}]   ;;  %s2023_s4 = inlined_call_operand.vmem [shape: f32[16,72], index: 4, kind: input, shape index: {}]   ;;  %s2024_s5 = inlined_call_operand.vmem [shape: f32[16,1], index: 5, kind: input, shape index: {}]   ;;  %s2025_s6 = inlined_call_operand.vmem [shape: f32[16,1], index: 6, kind: input, shape index: {}]   ;;  %s2026_s7 = inlined_call_operand.vmem [shape: f32[8,16], index: 7, kind: input, shape index: {}]   ;;  %s2027_s8 = inlined_call_operand.vmem [shape: f32[8,1], index: 8, kind: input, shape index: {}]   ;;  %s2028_s9 = inlined_call_operand.vmem [shape: f32[8,1], index: 9, kind: input, shape index: {}]   ;;  %s2029_s10 = inlined_call_operand.vmem [shape: f32[16,72], index: 10, kind: input, shape index: {}]   ;;  %s2030_s11 = inlined_call_operand.vmem [shape: f32[16,1], index: 11, kind: input, shape index: {}]   ;;  %s2031_s12 = inlined_call_operand.vmem [shape: f32[16,1], index: 12, kind: input, shape index: {}]   ;;  %s2032_s13 = inlined_call_operand.vmem [shape: f32[239,64], index: 13, kind: input, shape index: {}]   ;;  %s2033_s14 = inlined_call_operand.hbm [shape: f32[2,16,64], index: 14, kind: output, shape index: {}]  }
   0x1   :  { %2045 = sst [smem:[#allocation7_spill]] %s2019_s0 }
   0x2   :  { %2046 = sst [smem:[#allocation8_spill]] %s2020_s1 }
   0x3   :  { %2047 = sst [smem:[#allocation9_spill]] %s2021_s2 }
   0x4   :  { %19 = vsyncpa [#allocation3], 0 }
   0x5   :  { %21 = vsyncpa [#allocation3 + $0x1], 0  ;;  %s1540_s29 = smov 0   ;;  %s1542_s30 = smov 0  }
   0x6   :  { %s1544_s15 = smov 0   ;;  %s1546_s16 = smov 0  }
   0x7 LB: > { %2048 = sst [smem:[#allocation5_spill]] %s1447_s15  ;;  %s1561_s17 = sadd.s32 4294967295, %s1451_s16   ;;  %s1451_s16 = sphi %s1546_s16, %s2072_s16   ;;  %s1447_s15 = sphi %s1544_s15, %s2069_s15   ;;  %s1443_s30 = sphi %s1542_s30, %s2071_s30   ;;  %s1439_s29 = sphi %s1540_s29, %s2070_s29  }
   0x8   : > { %s1250_s18 = sadd.s32 4294967294, %s1451_s16   ;;  %s1565_s19 = sadd.s32 1, %s1451_s16  }
   0x9   : > { %s333_s20 = sadd.s32 1, %s1447_s15  ;;  %s330_s21 = ssub.s32 %s1451_s16, %s1565_s19 }
   0xa   : > { %p343_p0 = scmp.ne.s32.totalorder %s1447_s15, %s1443_s30  ;;  %p331_p1 = scmp.eq.s32.totalorder %s330_s21, 0 }
   0xb   : > { %p344_p2 = scmp.eq.s32.totalorder %s1561_s17, 1  ;;  %p349_p3 = scmp.ne.s32.totalorder %s1443_s30, %s1439_s29 }
   0xc   : > { %p350_p4 = scmp.eq.s32.totalorder %s1250_s18, 1  ;;  %p1253_p7 = scmp.ge.s32.totalorder %s1451_s16, 1 }
   0xd   : > { %s1576_s22 = scalar_select %p331_p1, %s1447_s15, %s333_s20  }
   0xe   : > { %p1578_p5 = por %p344_p2, %p343_p0  ;;  %p1582_p6 = por %p350_p4, %p349_p3 }
   0xf   : > { %2049 = sst [smem:[#allocation6_spill]] %s1576_s22  ;;  %p415_p8 = scmp.lt.s32.totalorder %s1451_s16, 3 }
  0x11   : > { %p416_p9 = pnand %p1253_p7, %p415_p8 }
  0x12   : > { %s2052_s2 = sld [smem:[#allocation9_spill]] (!%p416_p9)  ;;  %p461_p10 = scmp.lt.s32.totalorder (!%p416_p9), %s1561_s17, 1 }
  0x13   : > { %419 = sbr.rel (%p416_p9) target bundleno = 1538 (0x602), region = 76  ;;  %s2053_s0 = sld [smem:[#allocation7_spill]] (!%p416_p9) }
  0x14   : > { %s2054_s1 = sld [smem:[#allocation8_spill]] (!%p416_p9)  ;;  %s1454_s15 = smov (!%p416_p9), 17  }
  0x15   : > { %s1455_s22 = smov (!%p416_p9), 94   ;;  %s2041_s18 = smov (!%p416_p9), 110  }
  0x16   : > { %s2035_s20 = smov (!%p416_p9), 111   ;;  %s1461_s25 = smov (!%p416_p9), 126  }
  0x17   : > { %s2043_s26 = smov (!%p416_p9), 127  }
  0x18   : > { %v468_v0 = vld [vmem:[%s2052_s2] sm:$0xff]  ;;  %v1453_v1 = vmov 0   ;;  %s462_s27 = scalar_select %p461_p10, %s1561_s17, 1  ;;  %vm484_vm0 = vcmask 1043456   ;;  %vm480_vm1 = vcmask 31744   ;;  %vm551_vm2 = vcmask 138240  }
  0x19   : > { %1356 = vset.pattern.permute.xlu0 %v1453_v1  ;;  %1372 = vset.pattern.permute.xlu1 %v1453_v1  ;;  %v469_v3 = vld [vmem:[%s2022_s3] sm:$0xff]  ;;  %v475_v23 = vld [vmem:[%s2025_s6 + $0x8] sm:$0xff]  ;;  %v558_v25 = vlaneseq  ;;  %vm651_vm3 = vcmask 769024   ;;  %vm686_vm6 = vcmask 777216   ;;  %vm638_vm7 = vcmask 785408  }
  0x1a   : > { %531 = vperm.xlu0 %1356, %v468_v0   ;;  %1373 = vset.pattern.permute.xlu2 %v1453_v1  ;;  %s1303_s28 = sshll.u32 %s462_s27, 3  ;;  %v467_v4 = vld [vmem:[%s2054_s1] sm:$0xff]  ;;  %s2037_s27 = smov 95   ;;  %vm625_vm10 = vcmask 900096   ;;  %vm675_vm11 = vcmask 908288   ;;  %v473_v57 = vld [vmem:[%s2024_s5 + $0x8] sm:$0xff] }
  0x1b   : > { %s465_s21 = scalar_lea.vmem %s2053_s0, %s1303_s28  ;;  %s1457_s28 = smov 96   ;;  %v778_v24 = vld [vmem:[%s2028_s9] sm:$0xff]  ;;  %v559_v26 = vand.u32 127, %v558_v25  ;;  %vm612_vm12 = vcmask 916480   ;;  %vm599_vm13 = vcmask 1031168   ;;  %vm664_vm14 = vcmask 1039360  }
  0x1c   : > { %v466_v2 = vld [vmem:[%s465_s21] sm:$0xff]  ;;  %s2039_s21 = smov 112   ;;  %vm691_vm15 = vcmask 588800   ;;  %v780_v36 = vld [vmem:[%s2029_s10 + $0x8] sm:$0xff] }
  0x1d   : > { %477 = vst [vmem:[#allocation1] ss:$2 sm:$0xff] %v466_v2  ;;  %v565_v28 = vand.u32 15, %v559_v26  ;;  %v560_v33 = vadd.s32 128, %v559_v26  ;;  %v474_v1 = vld [vmem:[%s2025_s6] sm:$0xff] }
  0x1e   : > { %v472_v2 = vld [vmem:[%s2024_s5] sm:$0xff] }
  0x1f   : > { %vm1650_vm4 = vcmp.ne.s32.totalorder %v565_v28, 15  ;;  %v572_v34 = vand.u32 15, %v560_v33  ;;  %vm1666_vm8 = vcmp.ne.s32.totalorder %v565_v28, 0  ;;  %v779_v29 = vld [vmem:[%s2029_s10] sm:$0xff] }
  0x21   : > { %vm1657_vm5 = vcmp.ne.s32.totalorder %v572_v34, 15  ;;  %vm1670_vm9 = vcmp.ne.s32.totalorder %v572_v34, 0 }
  0x22   : > { %538 = vperm.xlu0 %1356, %v469_v3  }
  0x24   : > { %v478_v5 = vld.sshfl [vmem:[#allocation1] sm:$0xff pattern:$0x75316420]  ;;  %v479_v6 = vld.sshfl [vmem:[#allocation1 + $0x8] sm:$0xff pattern:$0x75316420] }
  0x25   : > { %1257 = vmatpush.msk.msra.mxu0 %vm484_vm0, %v478_v5  ;;  %1259 = vmatpush.msk.msra.mxu1 %vm484_vm0, %v479_v6  ;;  %vm785_vm0 = vcmask 130048  }
  0x26   : > { %1258 = vmatmul.msk.f32.vlgmr.msra.gmra.mxu0 %vm480_vm1, %v467_v4  ;;  %1260 = vmatmul.msk.f32.vlgmr.msra.gmra.mxu1 %vm480_vm1, %v467_v4  ;;  %vm1119_vm1 = vcmask 1046528  }
  0x8c   : > { %v532_v7 = vpop.permute.xlu0 %531 }
  0x94   : > { %v539_v10 = vpop.permute.xlu0 %538 }
  0xa3   : > { %v506_v8 = vpop.f32.mrf.mxu0  ;;  %v526_v11 = vpop.f32.mrf.mxu1 }
  0xa4   : > { %v534_v9 = vmul.f32 %v532_v7, %v506_v8  ;;  %v535_v13 = vmul.f32 %v532_v7, %v526_v11  ;;  %v777_v7 = vld [vmem:[%s2027_s8] sm:$0xff] }
  0xa6   : > { %v541_v12 = vadd.f32 %v539_v10, %v534_v9  ;;  %v542_v15 = vadd.f32 %v539_v10, %v535_v13 }
  0xa8   : > { %v543_v14 = vmax.f32 %v541_v12, 0.0  ;;  %v544_v16 = vmax.f32 %v542_v15, 0.0  ;;  %v470_v15 = vld [vmem:[%s2023_s4] sm:$0xff] }
  0xaa   : > { %547 = vrot.lane.b32.xlu1 %v543_v14, %s1454_s15 }
  0xb2   : > { %549 = vrot.lane.b32.xlu1 %v544_v16, %s1454_s15 }
 0x11c   : > { %v548_v17 = vpop.permute.xlu1 %547 }
 0x11d   : > { %v1605_v18 = vsel %vm551_vm2, 0.0, %v548_v17 }
 0x11e   : > { %645 = vrot.lane.b32.xlu2 %v1605_v18, %s1455_s22 }
 0x124   : > { %v550_v19 = vpop.permute.xlu1 %549 }
 0x125   : > { %v1610_v20 = vsel %vm551_vm2, %v548_v17, %v550_v19  ;;  %v557_v21 = vsel %vm551_vm2, %v550_v19, 0.0  ;;  %v471_v19 = vld [vmem:[%s2023_s4 + $0x8] sm:$0xff] }
 0x126   : > { %649 = vrot.lane.b32.xlu0 %v557_v21, %s1455_s22  ;;  %647 = vrot.lane.b32.xlu2 %v1610_v20, %s1455_s22  ;;  %v1357_v22 = vpack.i.bf16 %v1610_v20, %v1605_v18 }
 0x128   : > { %1358 = vrot.lane.b32.xlu1 %v1357_v22, %s2037_s27 }
 0x12e   : > { %632 = vrot.lane.b32.xlu0 %v1605_v18, %s1457_s28  ;;  %684 = vrot.lane.b32.xlu2 %v557_v21, %s2037_s27  ;;  %s2065_s27 = smov 111  }
 0x130   : > { %634 = vrot.lane.b32.xlu1 %v1610_v20, %s1457_s28 }
 0x136   : > { %619 = vrot.lane.b32.xlu0 %v1605_v18, %s2041_s18  ;;  %636 = vrot.lane.b32.xlu2 %v557_v21, %s1457_s28 }
 0x138   : > { %621 = vrot.lane.b32.xlu1 %v1610_v20, %s2041_s18 }
 0x13e   : > { %1363 = vrot.lane.b32.xlu0 %v1357_v22, %s2035_s20  ;;  %623 = vrot.lane.b32.xlu2 %v557_v21, %s2041_s18  ;;  %s2066_s18 = smov 112  }
 0x140   : > { %673 = vrot.lane.b32.xlu1 %v557_v21, %s2035_s20 }
 0x146   : > { %608 = vrot.lane.b32.xlu0 %v1610_v20, %s2039_s21  ;;  %606 = vrot.lane.b32.xlu2 %v1605_v18, %s2039_s21 }
 0x148   : > { %610 = vrot.lane.b32.xlu1 %v557_v21, %s2039_s21  ;;  %s2064_s21 = smov 95  }
 0x14e   : > { %595 = vrot.lane.b32.xlu0 %v1610_v20, %s1461_s25  ;;  %593 = vrot.lane.b32.xlu2 %v1605_v18, %s1461_s25 }
 0x150   : > { %597 = vrot.lane.b32.xlu1 %v557_v21, %s1461_s25 }
 0x156   : > { %662 = vrot.lane.b32.xlu0 %v557_v21, %s2043_s26  ;;  %1368 = vrot.lane.b32.xlu2 %v1357_v22, %s2043_s26 }
 0x158   : > { %751 = vperm.xlu1 %1372, %v473_v57  }
 0x15e   : > { %765 = vperm.xlu0 %1356, %v475_v23   ;;  %746 = vperm.xlu2 %1373, %v472_v2  }
 0x160   : > { %760 = vperm.xlu1 %1372, %v474_v1  }
 0x166   : > { %838 = vperm.xlu0 %1356, %v778_v24   ;;  %831 = vperm.xlu2 %1373, %v777_v7  }
 0x178   : > { %v646_v27 = vpop.permute.xlu2 %645 }
 0x180   : > { %v648_v30 = vpop.permute.xlu2 %647 }
 0x181   : > { %v652_v31 = vsel %vm651_vm3, %v646_v27, %v648_v30 }
 0x182   : > { %1261 = vmatpush.msk.msra.mxu2 %vm1650_vm4, %v652_v31 }
 0x188   : > { %v685_v32 = vpop.permute.xlu2 %684 }
 0x190   : > { %v637_v35 = vpop.permute.xlu2 %636 }
 0x198   : > { %v650_v37 = vpop.permute.xlu0 %649  ;;  %v624_v44 = vpop.permute.xlu2 %623 }
 0x199   : > { %v653_v38 = vsel %vm651_vm3, %v648_v30, %v650_v37  ;;  %v776_v37 = vld [vmem:[%s2026_s7] sm:$0xff] }
 0x19a   : > { %v1359_v39 = vpop.permute.xlu1 %1358  ;;  %1269 = vmatpush.msk.msra.mxu3 %vm1657_vm5, %v653_v38 }
 0x19b   : > { %v1361_v40 = vunpack.i.h.bf16 %v1359_v39  ;;  %v1360_v41 = vunpack.i.l.bf16 %v1359_v39 }
 0x19d   : > { %v687_v42 = vsel %vm686_vm6, %v1360_v41, %v1361_v40  ;;  %v688_v43 = vsel %vm686_vm6, %v1361_v40, %v685_v32 }
 0x19e   : > { %706 = vmatpush.msra.mxu2 %v687_v42  ;;  %729 = vmatpush.msra.mxu3 %v688_v43 }
 0x1a0   : > { %v633_v45 = vpop.permute.xlu0 %632  ;;  %v607_v51 = vpop.permute.xlu2 %606 }
 0x1a2   : > { %v635_v48 = vpop.permute.xlu1 %634 }
 0x1a3   : > { %v639_v49 = vsel %vm638_vm7, %v633_v45, %v635_v48  ;;  %v640_v50 = vsel %vm638_vm7, %v635_v48, %v637_v35 }
 0x1a4   : > { %1262 = vmatpush.msk.msra.mxu2 %vm1666_vm8, %v639_v49  ;;  %1270 = vmatpush.msk.msra.mxu3 %vm1670_vm9, %v640_v50 }
 0x1a8   : > { %v620_v52 = vpop.permute.xlu0 %619  ;;  %v594_v60 = vpop.permute.xlu2 %593 }
 0x1aa   : > { %v622_v53 = vpop.permute.xlu1 %621 }
 0x1ab   : > { %v626_v54 = vsel %vm625_vm10, %v620_v52, %v622_v53  ;;  %v627_v55 = vsel %vm625_vm10, %v622_v53, %v624_v44 }
 0x1ac   : > { %1263 = vmatpush.msk.msra.mxu2 %vm1650_vm4, %v626_v54  ;;  %1271 = vmatpush.msk.msra.mxu3 %vm1657_vm5, %v627_v55 }
 0x1b0   : > { %v1364_v56 = vpop.permute.xlu0 %1363  ;;  %v1369_v6 = vpop.permute.xlu2 %1368 }
 0x1b1   : > { %v1366_v58 = vunpack.i.h.bf16 %v1364_v56  ;;  %v1365_v59 = vunpack.i.l.bf16 %v1364_v56  ;;  %v1371_v8 = vunpack.i.h.bf16 %v1369_v6  ;;  %v1370_v9 = vunpack.i.l.bf16 %v1369_v6 }
 0x1b2   : > { %v674_v61 = vpop.permute.xlu1 %673 }
 0x1b3   : > { %v676_v62 = vsel %vm675_vm11, %v1365_v59, %v1366_v58  ;;  %v677_v63 = vsel %vm675_vm11, %v1366_v58, %v674_v61  ;;  %v665_v13 = vsel %vm664_vm14, %v1370_v9, %v1371_v8  ;;  %v781_v61 = vld [vmem:[%s2030_s11] sm:$0xff] }
 0x1b4   : > { %709 = vmatpush.msra.mxu2 %v676_v62  ;;  %732 = vmatpush.msra.mxu3 %v677_v63  ;;  %v783_v62 = vld [vmem:[%s2031_s12] sm:$0xff]  ;;  %v784_v63 = vld [vmem:[%s2031_s12 + $0x8] sm:$0xff] }
 0x1b8   : > { %v609_v0 = vpop.permute.xlu0 %608  ;;  %v747_v22 = vpop.permute.xlu2 %746 }
 0x1b9   : > { %v613_v3 = vsel %vm612_vm12, %v607_v51, %v609_v0 }
 0x1ba   : > { %v611_v4 = vpop.permute.xlu1 %610  ;;  %1264 = vmatpush.msk.msra.mxu2 %vm1666_vm8, %v613_v3 }
 0x1bb   : > { %v614_v5 = vsel %vm612_vm12, %v609_v0, %v611_v4 }
 0x1bc   : > { %1272 = vmatpush.msk.msra.mxu3 %vm1670_vm9, %v614_v5 }
 0x1c0   : > { %v596_v10 = vpop.permute.xlu0 %595  ;;  %v832_v42 = vpop.permute.xlu2 %831 }
 0x1c1   : > { %v600_v11 = vsel %vm599_vm13, %v594_v60, %v596_v10  ;;  %v782_v60 = vld [vmem:[%s2030_s11 + $0x8] sm:$0xff] }
 0x1c2   : > { %v598_v12 = vpop.permute.xlu1 %597  ;;  %1265 = vmatpush.msk.msra.mxu2 %vm1650_vm4, %v600_v11 }
 0x1c3   : > { %v601_v14 = vsel %vm599_vm13, %v596_v10, %v598_v12 }
 0x1c4   : > { %712 = vmatpush.msra.mxu2 %v665_v13  ;;  %1273 = vmatpush.msk.msra.mxu3 %vm1657_vm5, %v601_v14 }
 0x1c6   : > { %1266 = vmatpush.msk.msra.mxu2 %vm1666_vm8, %v1605_v18 }
 0x1c7   : > { %1267 = vmatmul.msk.f32.vlgmr.msra.gmra.mxu2 %vm691_vm15, %v470_v15 }
 0x1c8   : > { %v663_v16 = vpop.permute.xlu0 %662 }
 0x1c9   : > { %v666_v17 = vsel %vm664_vm14, %v1371_v8, %v663_v16 }
 0x1ca   : > { %735 = vmatpush.msra.mxu3 %v666_v17  ;;  %v752_v18 = vpop.permute.xlu1 %751 }
 0x1cc   : > { %1274 = vmatpush.msk.msra.mxu3 %vm1670_vm9, %v1610_v20 }
 0x1cd   : > { %1275 = vmatmul.msk.f32.vlgmr.msra.gmra.mxu3 %vm691_vm15, %v470_v15 }
 0x1cf   : > { %1268 = vmatmul.msk.f32.gmra.mxu2 %vm691_vm15, %v471_v19 }
 0x1d0   : > { %v766_v28 = vpop.permute.xlu0 %765 }
 0x1d2   : > { %v761_v25 = vpop.permute.xlu1 %760 }
 0x1d5   : > { %1276 = vmatmul.msk.f32.gmra.mxu3 %vm691_vm15, %v471_v19 }
 0x1d8   : > { %v839_v45 = vpop.permute.xlu0 %838 }
 0x24a   : > { %v715_v21 = vpop.f32.mrf.mxu2 }
 0x24b   : > { %v754_v24 = vmul.f32 %v747_v22, %v715_v21 }
 0x24d   : > { %v1730_v20 = vadd.f32 %v761_v25, %v754_v24 }
 0x24f   : > { %v772_v35 = vmax.f32 %v1730_v20, 0.0 }
 0x250   : > { %v738_v23 = vpop.f32.mrf.mxu3 }
 0x251   : > { %v755_v31 = vmul.f32 %v747_v22, %v738_v23 }
 0x252   : > { %v718_v26 = vpop.f32.mrf.mxu2 }
 0x253   : > { %v756_v27 = vmul.f32 %v752_v18, %v718_v26  ;;  %v1745_v39 = vadd.f32 %v761_v25, %v755_v31 }
 0x255   : > { %v1732_v30 = vadd.f32 %v766_v28, %v756_v27  ;;  %v773_v41 = vmax.f32 %v1745_v39, 0.0 }
 0x257   : > { %v774_v32 = vmax.f32 %v1732_v30, 0.0  ;;  %v1097_v30 = vld [vmem:[%s2032_s13 + $0x70] sm:$0xff] }
 0x258   : > { %v741_v33 = vpop.f32.mrf.mxu3 }
 0x259   : > { %v757_v34 = vmul.f32 %v752_v18, %v741_v33  ;;  %803 = vmatpush.msrb.mxu0 %v774_v32 }
 0x25b   : > { %804 = vmatpush.msrb.mxu0 %v772_v35  ;;  %v1743_v38 = vadd.f32 %v766_v28, %v757_v34 }
 0x25c   : > { %1277 = vmatmul.msk.f32.vlgmr.msrb.gmra.mxu0 %vm785_vm0, %v776_v37 }
 0x25d   : > { %v775_v40 = vmax.f32 %v1743_v38, 0.0  ;;  %v1098_v38 = vld [vmem:[%s2032_s13 + $0x78] sm:$0xff] }
 0x25e   : > { %1123 = vmatpush.msrb.mxu2 %v1098_v38 }
 0x25f   : > { %823 = vmatpush.msrb.mxu1 %v775_v40 }
 0x260   : > { %1124 = vmatpush.msrb.mxu2 %v1097_v30 }
 0x261   : > { %824 = vmatpush.msrb.mxu1 %v773_v41 }
 0x262   : > { %1278 = vmatmul.msk.f32.vlgmr.msrb.gmra.mxu1 %vm785_vm0, %v776_v37 }
 0x2d9   : > { %v806_v43 = vpop.f32.mrf.mxu0 }
 0x2da   : > { %v834_v44 = vmul.f32 %v832_v42, %v806_v43 }
 0x2dc   : > { %v841_v48 = vadd.f32 %v839_v45, %v834_v44 }
 0x2de   : > { %v843_v49 = vmax.f32 %v841_v48, 0.0 }
 0x2df   : > { %v826_v50 = vpop.f32.mrf.mxu1 }
 0x2e0   : > { %v835_v51 = vmul.f32 %v832_v42, %v826_v50  ;;  %847 = vrot.lane.b32.xlu1 %v843_v49, %s1454_s15 }
 0x2e2   : > { %v842_v52 = vadd.f32 %v839_v45, %v835_v51 }
 0x2e4   : > { %v844_v53 = vmax.f32 %v842_v52, 0.0 }
 0x2e6   : > { %849 = vrot.lane.b32.xlu2 %v844_v53, %s1454_s15  ;;  %s2063_s15 = smov 110  }
 0x340   : > { %v850_v54 = vpop.permute.xlu2 %849 }
 0x341   : > { %v856_v55 = vsel %vm551_vm2, %v850_v54, 0.0 }
 0x342   : > { %913 = vrot.lane.b32.xlu2 %v856_v55, %s1455_s22 }
 0x352   : > { %v848_v56 = vpop.permute.xlu1 %847 }
 0x353   : > { %v1758_v57 = vsel %vm551_vm2, %v848_v56, %v850_v54  ;;  %v1761_v58 = vsel %vm551_vm2, 0.0, %v848_v56  ;;  %vm1169_vm2 = vcmask 523264  }
 0x354   : > { %897 = vrot.lane.b32.xlu2 %v1761_v58, %s1457_s28  ;;  %909 = vrot.lane.b32.xlu0 %v1761_v58, %s1455_s22  ;;  %v1374_v59 = vpack.i.bf16 %v1758_v57, %v1761_v58 }
 0x355   : > { %911 = vrot.lane.b32.xlu1 %v1758_v57, %s1455_s22  ;;  %s2067_s22 = smov 127  }
 0x35c   : > { %885 = vrot.lane.b32.xlu2 %v1761_v58, %s2063_s15  ;;  %1375 = vrot.lane.b32.xlu0 %v1374_v59, %s2064_s21 }
 0x35d   : > { %945 = vrot.lane.b32.xlu1 %v856_v55, %s2064_s21 }
 0x364   : > { %1380 = vrot.lane.b32.xlu2 %v1374_v59, %s2065_s27  ;;  %899 = vrot.lane.b32.xlu0 %v1758_v57, %s1457_s28 }
 0x365   : > { %901 = vrot.lane.b32.xlu1 %v856_v55, %s1457_s28 }
 0x36c   : > { %875 = vrot.lane.b32.xlu2 %v1758_v57, %s2066_s18  ;;  %887 = vrot.lane.b32.xlu0 %v1758_v57, %s2063_s15 }
 0x36d   : > { %889 = vrot.lane.b32.xlu1 %v856_v55, %s2063_s15  ;;  %s1304_s15 = sshll.u32 %s1561_s17, 4 }
 0x36e   : > { %s1184_s0 = scalar_lea.hbm %s2033_s14, %s1304_s15  ;;  %s1409_s15 = scalar_lea.hbm %s2033_s14, 32 }
 0x36f   : > { %s1187_s1 = sshll.u32 %s1184_s0, 4  ;;  %s1188_s1 = int_to_ptr.hbm [resolvable:$true] %s1187_s1 }
 0x370   : > { %s1403_s28 = sshra.s32 %s1188_s1, 4  ;;  %s1404_s28 = int_to_ptr.hbm [resolvable:$true] %s1403_s28 }
 0x371   : > { %s1405_s2 = scalar_lea.hbm %s1404_s28, 16  ;;  %p1410_p0 = scmp.lt.s32.totalorder %s1404_s28, %s2033_s14 }
 0x372   : > { %p1406_p11 = scmp.ne.s32.totalorder %s1404_s28, %s1405_s2  ;;  %p1411_p1 = scmp.lt.s32.totalorder %s1409_s15, %s1405_s2 }
 0x374   : > { %863 = vrot.lane.b32.xlu2 %v1758_v57, %s1461_s25  ;;  %935 = vrot.lane.b32.xlu0 %v856_v55, %s2065_s27  ;;  %p1407_p12 = pnand %p1406_p11, %p1578_p5  ;;  %p1412_p2 = por %p1411_p1, %p1410_p0 }
 0x375   : > { %873 = vrot.lane.b32.xlu1 %v1761_v58, %s2066_s18 }
 0x376   : > { %p1408_p13 = pneg %p1407_p12 }
 0x378   : > { %p1413_p3 = pnand %p1412_p2, %p1408_p13 }
 0x37c   : > { %925 = vrot.lane.b32.xlu2 %v856_v55, %s2067_s22  ;;  %877 = vrot.lane.b32.xlu0 %v856_v55, %s2066_s18 }
 0x37d   : > { %861 = vrot.lane.b32.xlu1 %v1761_v58, %s1461_s25 }
 0x384   : > { %1010 = vperm.xlu2 %1373, %v782_v60   ;;  %865 = vrot.lane.b32.xlu0 %v856_v55, %s1461_s25 }
 0x385   : > { %1385 = vrot.lane.b32.xlu1 %v1374_v59, %s2067_s22 }
 0x38c   : > { %1005 = vperm.xlu0 %1356, %v781_v61  }
 0x38d   : > { %1019 = vperm.xlu1 %1372, %v783_v62  }
 0x394   : > { %1024 = vperm.xlu0 %1356, %v784_v63  }
 0x39c   : > { %v914_v0 = vpop.permute.xlu2 %913 }
 0x3ae   : > { %v898_v1 = vpop.permute.xlu2 %897 }
 0x3b6   : > { %v886_v10 = vpop.permute.xlu2 %885 }
 0x3be   : > { %v1381_v17 = vpop.permute.xlu2 %1380 }
 0x3bf   : > { %v1383_v19 = vunpack.i.h.bf16 %v1381_v17  ;;  %v1382_v18 = vunpack.i.l.bf16 %v1381_v17  ;;  %v1093_v17 = vld [vmem:[%s2032_s13 + $0x50] sm:$0xff] }
 0x3c1   : > { %v937_v25 = vsel %vm675_vm11, %v1382_v18, %v1383_v19  ;;  %v1092_v18 = vld [vmem:[%s2032_s13 + $0x48] sm:$0xff] }
 0x3c6   : > { %v910_v2 = vpop.permute.xlu0 %909  ;;  %v876_v26 = vpop.permute.xlu2 %875 }
 0x3c7   : > { %v912_v3 = vpop.permute.xlu1 %911 }
 0x3c8   : > { %v915_v4 = vsel %vm651_vm3, %v910_v2, %v912_v3  ;;  %v916_v5 = vsel %vm651_vm3, %v912_v3, %v914_v0 }
 0x3c9   : > { %1279 = vmatpush.msk.msra.mxu0 %vm1650_vm4, %v915_v4  ;;  %1287 = vmatpush.msk.msra.mxu1 %vm1657_vm5, %v916_v5 }
 0x3ce   : > { %v1376_v6 = vpop.permute.xlu0 %1375  ;;  %v864_v37 = vpop.permute.xlu2 %863 }
 0x3cf   : > { %v1378_v7 = vunpack.i.h.bf16 %v1376_v6  ;;  %v1377_v8 = vunpack.i.l.bf16 %v1376_v6  ;;  %v946_v9 = vpop.permute.xlu1 %945 }
 0x3d1   : > { %v947_v11 = vsel %vm686_vm6, %v1377_v8, %v1378_v7  ;;  %v948_v12 = vsel %vm686_vm6, %v1378_v7, %v946_v9 }
 0x3d2   : > { %965 = vmatpush.msra.mxu0 %v947_v11  ;;  %988 = vmatpush.msra.mxu1 %v948_v12  ;;  %v1096_v11 = vld [vmem:[%s2032_s13 + $0x68] sm:$0xff]  ;;  %v1110_v12 = vld [vmem:[%s2032_s13 + $0xd8] sm:$0xff] }
 0x3d3   : > { %1125 = vmatpush.msrb.mxu2 %v1096_v11 }
 0x3d6   : > { %v900_v13 = vpop.permute.xlu0 %899  ;;  %v926_v52 = vpop.permute.xlu2 %925 }
 0x3d7   : > { %v903_v14 = vsel %vm638_vm7, %v898_v1, %v900_v13  ;;  %v902_v15 = vpop.permute.xlu1 %901 }
 0x3d8   : > { %v904_v16 = vsel %vm638_vm7, %v900_v13, %v902_v15  ;;  %1280 = vmatpush.msk.msra.mxu0 %vm1666_vm8, %v903_v14  ;;  %v1095_v13 = vld [vmem:[%s2032_s13 + $0x60] sm:$0xff]  ;;  %v1109_v14 = vld [vmem:[%s2032_s13 + $0xd0] sm:$0xff]  ;;  %v1094_v15 = vld [vmem:[%s2032_s13 + $0x58] sm:$0xff] }
 0x3d9   : > { %1288 = vmatpush.msk.msra.mxu1 %vm1670_vm9, %v904_v16  ;;  %v1108_v16 = vld [vmem:[%s2032_s13 + $0xc8] sm:$0xff]  ;;  %1126 = vmatpush.msrb.mxu2 %v1095_v13 }
 0x3db   : > { %1127 = vmatpush.msrb.mxu2 %v1094_v15 }
 0x3dd   : > { %1128 = vmatpush.msrb.mxu2 %v1093_v17 }
 0x3de   : > { %v888_v21 = vpop.permute.xlu0 %887  ;;  %v1011_v63 = vpop.permute.xlu2 %1010 }
 0x3df   : > { %v891_v22 = vsel %vm625_vm10, %v886_v10, %v888_v21  ;;  %v890_v23 = vpop.permute.xlu1 %889  ;;  %1129 = vmatpush.msrb.mxu2 %v1092_v18 }
 0x3e0   : > { %v892_v24 = vsel %vm625_vm10, %v888_v21, %v890_v23  ;;  %1281 = vmatpush.msk.msra.mxu0 %vm1650_vm4, %v891_v22  ;;  %v1106_v21 = vld [vmem:[%s2032_s13 + $0xb8] sm:$0xff]  ;;  %v1091_v22 = vld [vmem:[%s2032_s13 + $0x40] sm:$0xff]  ;;  %v1105_v23 = vld [vmem:[%s2032_s13 + $0xb0] sm:$0xff] }
 0x3e1   : > { %1289 = vmatpush.msk.msra.mxu1 %vm1657_vm5, %v892_v24  ;;  %v1090_v24 = vld [vmem:[%s2032_s13 + $0x38] sm:$0xff]  ;;  %1130 = vmatpush.msrb.mxu2 %v1091_v22 }
 0x3e2   : > { %968 = vmatpush.msra.mxu0 %v937_v25  ;;  %v1104_v25 = vld [vmem:[%s2032_s13 + $0xa8] sm:$0xff] }
 0x3e3   : > { %1131 = vmatpush.msrb.mxu2 %v1090_v24 }
 0x3e6   : > { %v936_v27 = vpop.permute.xlu0 %935 }
 0x3e7   : > { %v874_v28 = vpop.permute.xlu1 %873  ;;  %v938_v31 = vsel %vm675_vm11, %v1383_v19, %v936_v27  ;;  %v1107_v19 = vld [vmem:[%s2032_s13 + $0xc0] sm:$0xff] }
 0x3e8   : > { %v879_v33 = vsel %vm612_vm12, %v874_v28, %v876_v26  ;;  %991 = vmatpush.msra.mxu1 %v938_v31  ;;  %v1103_v27 = vld [vmem:[%s2032_s13 + $0xa0] sm:$0xff]  ;;  %v1088_v28 = vld [vmem:[%s2032_s13 + $0x28] sm:$0xff]  ;;  %v1102_v31 = vld [vmem:[%s2032_s13 + $0x98] sm:$0xff] }
 0x3e9   : > { %1282 = vmatpush.msk.msra.mxu0 %vm1666_vm8, %v879_v33 }
 0x3ee   : > { %v878_v34 = vpop.permute.xlu0 %877 }
 0x3ef   : > { %v880_v42 = vsel %vm612_vm12, %v876_v26, %v878_v34  ;;  %v862_v43 = vpop.permute.xlu1 %861  ;;  %v1089_v26 = vld [vmem:[%s2032_s13 + $0x30] sm:$0xff]  ;;  %v1087_v34 = vld [vmem:[%s2032_s13 + $0x20] sm:$0xff] }
 0x3f0   : > { %v867_v44 = vsel %vm599_vm13, %v862_v43, %v864_v37  ;;  %1290 = vmatpush.msk.msra.mxu1 %vm1670_vm9, %v880_v42  ;;  %1132 = vmatpush.msrb.mxu2 %v1089_v26 }
 0x3f1   : > { %1283 = vmatpush.msk.msra.mxu0 %vm1650_vm4, %v867_v44  ;;  %v1086_v44 = vld [vmem:[%s2032_s13 + $0x18] sm:$0xff] }
 0x3f2   : > { %1133 = vmatpush.msrb.mxu2 %v1088_v28 }
 0x3f4   : > { %1134 = vmatpush.msrb.mxu2 %v1087_v34 }
 0x3f6   : > { %v866_v45 = vpop.permute.xlu0 %865  ;;  %1135 = vmatpush.msrb.mxu2 %v1086_v44 }
 0x3f7   : > { %v868_v48 = vsel %vm599_vm13, %v864_v37, %v866_v45  ;;  %v1386_v49 = vpop.permute.xlu1 %1385  ;;  %v1101_v37 = vld [vmem:[%s2032_s13 + $0x90] sm:$0xff]  ;;  %v1100_v45 = vld [vmem:[%s2032_s13 + $0x88] sm:$0xff] }
 0x3f8   : > { %v1388_v50 = vunpack.i.h.bf16 %v1386_v49  ;;  %v1387_v51 = vunpack.i.l.bf16 %v1386_v49  ;;  %1291 = vmatpush.msk.msra.mxu1 %vm1657_vm5, %v868_v48  ;;  %v1085_v48 = vld [vmem:[%s2032_s13 + $0x10] sm:$0xff] }
 0x3f9   : > { %1136 = vmatpush.msrb.mxu2 %v1085_v48 }
 0x3fa   : > { %v927_v53 = vsel %vm664_vm14, %v1387_v51, %v1388_v50  ;;  %v928_v54 = vsel %vm664_vm14, %v1388_v50, %v926_v52 }
 0x3fb   : > { %971 = vmatpush.msra.mxu0 %v927_v53  ;;  %994 = vmatpush.msra.mxu1 %v928_v54  ;;  %v1084_v54 = vld [vmem:[%s2032_s13 + $0x8] sm:$0xff] }
 0x3fc   : > { %1137 = vmatpush.msrb.mxu2 %v1084_v54 }
 0x3fd   : > { %1284 = vmatpush.msk.msra.mxu0 %vm1666_vm8, %v1761_v58  ;;  %1292 = vmatpush.msk.msra.mxu1 %vm1670_vm9, %v1758_v57 }
 0x3fe   : > { %1285 = vmatmul.msk.f32.vlgmr.msra.gmra.mxu0 %vm691_vm15, %v779_v29  ;;  %1293 = vmatmul.msk.f32.vlgmr.msra.gmra.mxu1 %vm691_vm15, %v779_v29  ;;  %v1006_v55 = vpop.permute.xlu0 %1005  ;;  %v1099_v29 = vld [vmem:[%s2032_s13 + $0x80] sm:$0xff] }
 0x3ff   : > { %v1020_v60 = vpop.permute.xlu1 %1019 }
 0x406   : > { %1286 = vmatmul.msk.f32.gmra.mxu0 %vm691_vm15, %v780_v36  ;;  %1294 = vmatmul.msk.f32.gmra.mxu1 %vm691_vm15, %v780_v36  ;;  %v1025_v6 = vpop.permute.xlu0 %1024  ;;  %v1083_v36 = vld [vmem:[%s2032_s13] sm:$0xff] }
 0x407   : > { %1138 = vmatpush.msrb.mxu2 %v1083_v36 }
 0x47b   : > { %v974_v56 = vpop.f32.mrf.mxu0  ;;  %v997_v46 = vpop.f32.mrf.mxu1 }
 0x47c   : > { %v1013_v58 = vmul.f32 %v1006_v55, %v974_v56  ;;  %v1014_v59 = vmul.f32 %v1006_v55, %v997_v46 }
 0x47e   : > { %v1027_v47 = vadd.f32 %v1020_v60, %v1013_v58  ;;  %v1028_v57 = vadd.f32 %v1020_v60, %v1014_v59 }
 0x480   : > { %v1031_v61 = vmax.f32 %v1027_v47, 0.0  ;;  %v1032_v62 = vmax.f32 %v1028_v57, 0.0 }
 0x482   : > { %v1036_v0 = vadd.f32 %v1032_v62, %v773_v41  ;;  %v1863_v1 = vadd.f32 %v1031_v61, %v772_v35 }
 0x483   : > { %v977_v2 = vpop.f32.mrf.mxu0  ;;  %v1000_v3 = vpop.f32.mrf.mxu1 }
 0x484   : > { %v1015_v4 = vmul.f32 %v1011_v63, %v977_v2  ;;  %v1016_v5 = vmul.f32 %v1011_v63, %v1000_v3  ;;  %1045 = vrot.lane.b32.xlu2 %v1036_v0, %s2067_s22  ;;  %1043 = vrot.lane.b32.xlu1 %v1863_v1, %s2067_s22 }
 0x486   : > { %v1029_v7 = vadd.f32 %v1025_v6, %v1015_v4  ;;  %v1030_v8 = vadd.f32 %v1025_v6, %v1016_v5 }
 0x488   : > { %v1033_v9 = vmax.f32 %v1029_v7, 0.0  ;;  %v1034_v10 = vmax.f32 %v1030_v8, 0.0 }
 0x48a   : > { %v1870_v39 = vadd.f32 %v1034_v10, %v775_v40  ;;  %v1874_v20 = vadd.f32 %v1033_v9, %v774_v32  ;;  %v1112_v32 = vld [vmem:[%s2032_s13 + $0xe8] sm:$0x7f]  ;;  %v1111_v40 = vld [vmem:[%s2032_s13 + $0xe0] sm:$0xff] }
 0x48b   : > { %1295 = vmatpush.msk.msrb.mxu3 %vm1119_vm1, %v1112_v32 }
 0x48c   : > { %1049 = vrot.lane.b32.xlu1 %v1870_v39, %s2067_s22  ;;  %1047 = vrot.lane.b32.xlu0 %v1874_v20, %s2067_s22 }
 0x48d   : > { %1149 = vmatpush.msrb.mxu3 %v1111_v40 }
 0x48f   : > { %1150 = vmatpush.msrb.mxu3 %v1110_v12 }
 0x491   : > { %1151 = vmatpush.msrb.mxu3 %v1109_v14 }
 0x493   : > { %1152 = vmatpush.msrb.mxu3 %v1108_v16 }
 0x495   : > { %1153 = vmatpush.msrb.mxu3 %v1107_v19 }
 0x497   : > { %1154 = vmatpush.msrb.mxu3 %v1106_v21 }
 0x499   : > { %1155 = vmatpush.msrb.mxu3 %v1105_v23 }
 0x49b   : > { %1156 = vmatpush.msrb.mxu3 %v1104_v25 }
 0x49d   : > { %1157 = vmatpush.msrb.mxu3 %v1103_v27 }
 0x49f   : > { %1158 = vmatpush.msrb.mxu3 %v1102_v31 }
 0x4a1   : > { %1159 = vmatpush.msrb.mxu3 %v1101_v37 }
 0x4a3   : > { %1160 = vmatpush.msrb.mxu3 %v1100_v45 }
 0x4a5   : > { %1161 = vmatpush.msrb.mxu3 %v1099_v29 }
 0x4de   : > { %v1046_v35 = vpop.permute.xlu2 %1045 }
 0x4df   : > { %v1880_v41 = vmax.f32 %v1036_v0, %v1046_v35 }
 0x4e1   : > { %1067 = vrot.lane.b32.xlu0 %v1880_v41, %s2066_s18 }
 0x4f6   : > { %v1044_v33 = vpop.permute.xlu1 %1043 }
 0x4f7   : > { %v1051_v42 = vsel %vm664_vm14, %v1044_v33, %v1046_v35 }
 0x4f8   : > { %v1057_v43 = vmax.f32 %v1863_v1, %v1051_v42 }
 0x4fa   : > { %1065 = vrot.lane.b32.xlu2 %v1057_v43, %s2066_s18 }
 0x4fe   : > { %v1050_v49 = vpop.permute.xlu1 %1049  ;;  %v1048_v50 = vpop.permute.xlu0 %1047 }
 0x4ff   : > { %v1060_v51 = vmax.f32 %v1870_v39, %v1050_v49  ;;  %v1052_v52 = vsel %vm664_vm14, %v1048_v50, %v1050_v49 }
 0x500   : > { %v1059_v53 = vmax.f32 %v1874_v20, %v1052_v52 }
 0x502   : > { %1071 = vrot.lane.b32.xlu2 %v1060_v51, %s2066_s18  ;;  %1069 = vrot.lane.b32.xlu1 %v1059_v53, %s2066_s18  ;;  %s458_s18 = sand.u32 1, %s1443_s30  }
 0x503   : > { %s1254_s20 = sshll.u32 %s458_s18, 4  ;;  %s1173_s25 = scalar_lea.sflag [#allocation3], %s458_s18 }
 0x504   : > { %s460_s26 = scalar_lea.vmem [#allocation2], %s1254_s20 }
 0x505   : > { %s1185_s22 = sshll.u32 %s460_s26, 4  ;;  %s1186_s22 = int_to_ptr.vmem [resolvable:$true] %s1185_s22 }
 0x553   : > { %v1068_v55 = vpop.permute.xlu0 %1067 }
 0x554   : > { %v1080_v56 = vmax.f32 %v1880_v41, %v1068_v55  ;;  %v1066_v46 = vpop.permute.xlu2 %1065 }
 0x555   : > { %v1073_v58 = vsel %vm612_vm12, %v1066_v46, %v1068_v55 }
 0x556   : > { %v1079_v59 = vmax.f32 %v1057_v43, %v1073_v58  ;;  %1296 = vmatmul.msk.f32.vlgmr.msrb.gmra.mxu3 %vm675_vm11, %v1080_v56 }
 0x558   : > { %1139 = vmatmul.f32.vlgmr.msrb.gmra.mxu2 %v1079_v59 }
 0x55c   : > { %v1072_v60 = vpop.permute.xlu2 %1071 }
 0x55d   : > { %v1082_v47 = vmax.f32 %v1060_v51, %v1072_v60 }
 0x55f   : > { %1297 = vmatmul.msk.f32.gmra.mxu3 %vm675_vm11, %v1082_v47 }
 0x574   : > { %v1070_v57 = vpop.permute.xlu1 %1069 }
 0x575   : > { %v1074_v61 = vsel %vm612_vm12, %v1070_v57, %v1072_v60 }
 0x576   : > { %v1081_v62 = vmax.f32 %v1059_v53, %v1074_v61 }
 0x578   : > { %1142 = vmatmul.f32.gmra.mxu2 %v1081_v62 }
 0x5d9   : > { %v1163_v63 = vpop.f32.mrf.mxu3 }
 0x5db   : > { %v1140_v0 = vpop.f32.mrf.mxu2 }
 0x5dc   : > { %v1164_v1 = vadd.f32 %v1163_v63, %v1140_v0 }
 0x5de   : > { %1170 = vst.msk [vmem:[%s460_s26] sm:$0xff] %vm1169_vm2, %v1164_v1 }
 0x5e2   : > { %v1166_v2 = vpop.f32.mrf.mxu3 }
 0x5fb   : > { %v1143_v3 = vpop.f32.mrf.mxu2 }
 0x5fc   : > { %v1167_v4 = vadd.f32 %v1166_v2, %v1143_v3 }
 0x5fe   : > { %1171 = vst.msk [vmem:[%s460_s26 + $0x8] sm:$0xff] %vm1169_vm2, %v1167_v4 }
 0x5ff   : > { %1416 = shalt.err (!%p1413_p3)
}
 0x600   : > { %s1463_s18 = smov 128   ;;  %s1464_s26 = smov 8  }
 0x601   : > { %1305 = dma.vmem_to_hbm [thread:$0]  (%p1578_p5), %s1186_s22, 256, %s1188_s1, %s1173_s25, %s1463_s18, %s1463_s18, %s1464_s26  }
 0x602 PF: > { %p1311_p4 = scmp.ge.s32.totalorder %s1451_s16, 2  ;;  %s1202_s0 = sand.u32 1, %s1439_s29  }
 0x603   : > { %s1203_s17 = scalar_lea.sflag [#allocation3], %s1202_s0 }
 0x604   : > { %p1308_p7 = pnand %p1311_p4, %p1582_p6 }
 0x606   : > { %p1309_p8 = pneg %p1308_p7 }
 0x608   : > { %1434 = dma.done.wait (%p1309_p8), %s1203_s17, 256  }
 0x609   : > { %1436 = vsyncadd (%p1309_p8), %s1203_s17, 4294967040  ;;  %s2068_s2 = sld [smem:[#allocation5_spill]]  ;;  %p24_p9 = scmp.ge.s32.totalorder %s1565_s19, 4  }
 0x60a   : > { %s2069_s15 = sld [smem:[#allocation6_spill]]  ;;  %s2070_s29 = smov %s1443_s30 }
 0x60b   : > { %s2072_s16 = smov %s1565_s19  ;;  %26 = sbr.rel (!%p24_p9) target bundleno = 7 (0x7), region = 111 }
 0x60f   : > { %s2071_s30 = smov %s2068_s2 }
 0x610   :  { %1209 = vsyncpa [#allocation3], 1 }
 0x611   :  { %1211 = vsyncpa [#allocation3 + $0x1], 1 }

</bundles_post_ra>
